<compile_context>
chip_gen: v7x
topology: tpu7x:2x2x1
jax: 0.10.0
libtpu: 0.0.40
codegen_flags: <defaults>
</compile_context>

<pallas_src>
import functools
import math

import jax
import jax.numpy as jnp
from jax import lax
from jax.experimental import pallas as pl
from jax.experimental.pallas import tpu as pltpu


_MXU_DTYPE = jnp.bfloat16      # MXU operand dtype; accumulation stays f32.
_ACT_DTYPE = jnp.bfloat16      # inter-kernel activations that feed the MXU.


# ------------------------------ tiling helpers ------------------------------

def _plan_rows(m, stream_row_bytes, temp_row_bytes=0, resident_bytes=0,
               budget_bytes=8 << 20, cap=512):
    """Rows per block so resident weights + double-buffered streamed tiles +
    per-row in-kernel temps fit the VMEM budget (cap keeps v7x happy and
    leaves >=2 grid steps at realistic sizes)."""
    avail = max(budget_bytes - resident_bytes, 1 << 20)
    tm = avail // max(2 * stream_row_bytes + temp_row_bytes, 1)
    tm = int(min(cap, max(8, (tm // 8) * 8)))
    return m if tm >= m else tm


def _vmem_limit(resident_bytes, working_bytes):
    """Explicit scoped-VMEM request: 2x estimated footprint, clamped above the
    v5e 16 MiB default and below v7x's 64 MiB physical VMEM."""
    est = resident_bytes + working_bytes
    return int(min(48 << 20, max(24 << 20, 2 * est)))


def _params(n_parallel, vmem_limit):
    return pltpu.CompilerParams(
        dimension_semantics=("parallel",) * n_parallel,
        vmem_limit_bytes=vmem_limit)


def _q_tile(nq, cap=128):
    return nq if nq <= cap else max(8, (cap // 8) * 8)


# ----------------------------- linear kernels -------------------------------

def _linear_kernel(x_ref, w_ref, b_ref, o_ref):
    y = jnp.dot(x_ref[...].astype(_MXU_DTYPE), w_ref[...],
                preferred_element_type=jnp.float32) + b_ref[...]
    o_ref[...] = y.astype(o_ref.dtype)


def linear(x2d, w, b, out_dtype=jnp.float32):
    """y = x2d @ w + b.  Row-tiled over M, bf16 weight block resident."""
    m, k = x2d.shape
    n = w.shape[1]
    resident = w.size * w.dtype.itemsize + n * 4
    stream_row = k * x2d.dtype.itemsize + n * jnp.dtype(out_dtype).itemsize
    tm = _plan_rows(m, stream_row, resident_bytes=resident)
    return pl.pallas_call(
        _linear_kernel,
        out_shape=jax.ShapeDtypeStruct((m, n), out_dtype),
        grid=(pl.cdiv(m, tm),),
        in_specs=[pl.BlockSpec((tm, k), lambda i: (i, 0)),
                  pl.BlockSpec((k, n), lambda i: (0, 0)),
                  pl.BlockSpec((1, n), lambda i: (0, 0))],
        out_specs=pl.BlockSpec((tm, n), lambda i: (i, 0)),
        compiler_params=_params(1, _vmem_limit(resident, 4 * tm * stream_row)),
    )(x2d, w, b.reshape(1, n))


def _posadd_linear_kernel(x_ref, p_ref, w_ref, b_ref, o_ref):
    xp = (x_ref[...] + p_ref[...]).astype(_MXU_DTYPE)     # q = x + pos in-kernel
    y = jnp.dot(xp, w_ref[...], preferred_element_type=jnp.float32) + b_ref[...]
    o_ref[...] = y.astype(o_ref.dtype)


def posadd_linear(x2d, pos2d, w, b, out_dtype=jnp.float32):
    """y = (x2d + pos2d) @ w + b — the pos add is fused, not materialized."""
    m, k = x2d.shape
    n = w.shape[1]
    resident = w.size * w.dtype.itemsize + n * 4
    stream_row = (k * x2d.dtype.itemsize + k * pos2d.dtype.itemsize
                  + n * jnp.dtype(out_dtype).itemsize)
    tm = _plan_rows(m, stream_row, resident_bytes=resident)
    return pl.pallas_call(
        _posadd_linear_kernel,
        out_shape=jax.ShapeDtypeStruct((m, n), out_dtype),
        grid=(pl.cdiv(m, tm),),
        in_specs=[pl.BlockSpec((tm, k), lambda i: (i, 0)),
                  pl.BlockSpec((tm, k), lambda i: (i, 0)),
                  pl.BlockSpec((k, n), lambda i: (0, 0)),
                  pl.BlockSpec((1, n), lambda i: (0, 0))],
        out_specs=pl.BlockSpec((tm, n), lambda i: (i, 0)),
        compiler_params=_params(1, _vmem_limit(resident, 4 * tm * stream_row)),
    )(x2d, pos2d, w, b.reshape(1, n))


def _qkv_kernel(x_ref, p_ref, wq_ref, wk_ref, wv_ref,
                bq_ref, bk_ref, bv_ref, q_ref, k_ref, v_ref):
    x = x_ref[...]
    xp = (x + p_ref[...]).astype(_MXU_DTYPE)               # q = k = x + pos
    xb = x.astype(_MXU_DTYPE)                               # v = x
    q_ref[...] = (jnp.dot(xp, wq_ref[...], preferred_element_type=jnp.float32)
                  + bq_ref[...]).astype(q_ref.dtype)
    k_ref[...] = (jnp.dot(xp, wk_ref[...], preferred_element_type=jnp.float32)
                  + bk_ref[...]).astype(k_ref.dtype)
    v_ref[...] = (jnp.dot(xb, wv_ref[...], preferred_element_type=jnp.float32)
                  + bv_ref[...]).astype(v_ref.dtype)


def qkv_proj(x2d, pos2d, sa):
    """Fused q/k/v projections: streams x and pos once, forms x+pos in-kernel.
    The 1/sqrt(head_dim) query scale is already folded into w_q/b_q."""
    m, d = x2d.shape
    ab = jnp.dtype(_ACT_DTYPE).itemsize
    resident = 3 * d * d * sa["w_q"].dtype.itemsize + 3 * d * 4
    stream_row = 2 * d * 4 + 3 * d * ab
    tm = _plan_rows(m, stream_row, resident_bytes=resident)
    wspec = pl.BlockSpec((d, d), lambda i: (0, 0))
    bspec = pl.BlockSpec((1, d), lambda i: (0, 0))
    xspec = pl.BlockSpec((tm, d), lambda i: (i, 0))
    return pl.pallas_call(
        _qkv_kernel,
        out_shape=tuple(jax.ShapeDtypeStruct((m, d), _ACT_DTYPE) for _ in range(3)),
        grid=(pl.cdiv(m, tm),),
        in_specs=[xspec, xspec, wspec, wspec, wspec, bspec, bspec, bspec],
        out_specs=tuple(pl.BlockSpec((tm, d), lambda i: (i, 0)) for _ in range(3)),
        compiler_params=_params(1, _vmem_limit(resident, 4 * tm * stream_row)),
    )(x2d, pos2d, sa["w_q"], sa["w_k"], sa["w_v"],
      sa["b_q"].reshape(1, d), sa["b_k"].reshape(1, d), sa["b_v"].reshape(1, d))


def _linear_res_ln_kernel(x_ref, w_ref, b_ref, r_ref, g_ref, bb_ref, o_ref, *, eps):
    y = jnp.dot(x_ref[...].astype(_MXU_DTYPE), w_ref[...],
                preferred_element_type=jnp.float32) + b_ref[...]
    h = y + r_ref[...]
    mu = jnp.mean(h, axis=-1, keepdims=True)
    var = jnp.mean((h - mu) ** 2, axis=-1, keepdims=True)
    o_ref[...] = (((h - mu) * lax.rsqrt(var + eps)) * g_ref[...]
                  + bb_ref[...]).astype(o_ref.dtype)


def linear_res_ln(x2d, w, b, res2d, gamma, beta, eps=1e-5):
    """LayerNorm(x2d @ w + b + res2d): matmul with fused residual+LN epilogue."""
    m, k = x2d.shape
    n = w.shape[1]
    resident = w.size * w.dtype.itemsize + 3 * n * 4
    stream_row = k * x2d.dtype.itemsize + 2 * n * 4
    tm = _plan_rows(m, stream_row, resident_bytes=resident)
    return pl.pallas_call(
        functools.partial(_linear_res_ln_kernel, eps=eps),
        out_shape=jax.ShapeDtypeStruct((m, n), jnp.float32),
        grid=(pl.cdiv(m, tm),),
        in_specs=[pl.BlockSpec((tm, k), lambda i: (i, 0)),
                  pl.BlockSpec((k, n), lambda i: (0, 0)),
                  pl.BlockSpec((1, n), lambda i: (0, 0)),
                  pl.BlockSpec((tm, n), lambda i: (i, 0)),
                  pl.BlockSpec((1, n), lambda i: (0, 0)),
                  pl.BlockSpec((1, n), lambda i: (0, 0))],
        out_specs=pl.BlockSpec((tm, n), lambda i: (i, 0)),
        compiler_params=_params(1, _vmem_limit(resident, 4 * tm * stream_row)),
    )(x2d, w, b.reshape(1, n), res2d, gamma.reshape(1, n), beta.reshape(1, n))


def _ffn_ln_kernel(x_ref, w1_ref, b1_ref, w2_ref, b2_ref, g_ref, bb_ref, o_ref, *, eps):
    x = x_ref[...]
    h = jnp.dot(x.astype(_MXU_DTYPE), w1_ref[...],
                preferred_element_type=jnp.float32) + b1_ref[...]
    h = jnp.maximum(h, 0.0)                               # relu (f32, VPU)
    y = jnp.dot(h.astype(_MXU_DTYPE), w2_ref[...],
                preferred_element_type=jnp.float32) + b2_ref[...]
    t = y + x                                             # residual
    mu = jnp.mean(t, axis=-1, keepdims=True)
    var = jnp.mean((t - mu) ** 2, axis=-1, keepdims=True)
    o_ref[...] = (((t - mu) * lax.rsqrt(var + eps)) * g_ref[...]
                  + bb_ref[...]).astype(o_ref.dtype)


def ffn_ln(x2d, w1, b1, w2, b2, gamma, beta, eps=1e-5):
    """LayerNorm(x + linear2(relu(linear1(x)))) — whole FFN in one kernel;
    the (tm, d_ffn) intermediate never leaves VMEM."""
    m, d = x2d.shape
    f = w1.shape[1]
    resident = (w1.size * w1.dtype.itemsize + w2.size * w2.dtype.itemsize
                + (f + 3 * d) * 4)
    stream_row = 2 * d * 4
    temp_row = f * 4
    tm = _plan_rows(m, stream_row, temp_row, resident_bytes=resident, cap=256)
    return pl.pallas_call(
        functools.partial(_ffn_ln_kernel, eps=eps),
        out_shape=jax.ShapeDtypeStruct((m, d), jnp.float32),
        grid=(pl.cdiv(m, tm),),
        in_specs=[pl.BlockSpec((tm, d), lambda i: (i, 0)),
                  pl.BlockSpec((d, f), lambda i: (0, 0)),
                  pl.BlockSpec((1, f), lambda i: (0, 0)),
                  pl.BlockSpec((f, d), lambda i: (0, 0)),
                  pl.BlockSpec((1, d), lambda i: (0, 0)),
                  pl.BlockSpec((1, d), lambda i: (0, 0)),
                  pl.BlockSpec((1, d), lambda i: (0, 0))],
        out_specs=pl.BlockSpec((tm, d), lambda i: (i, 0)),
        compiler_params=_params(
            1, _vmem_limit(resident, 4 * tm * stream_row + 2 * tm * temp_row)),
    )(x2d, w1, b1.reshape(1, f), w2, b2.reshape(1, d),
      gamma.reshape(1, d), beta.reshape(1, d))


# --------------------------- self-attention kernel --------------------------

def _mha_kernel(q_ref, k_ref, v_ref, o_ref, *, n_heads, head_dim):
    """One (batch, query-tile): all heads, single lane-dense output store."""
    outs = []
    for h in range(n_heads):
        c0, c1 = h * head_dim, (h + 1) * head_dim
        q = q_ref[0, :, c0:c1]                        # (tq, hd) bf16, pre-scaled
        k = k_ref[0, :, c0:c1]                        # (nk, hd) bf16
        v = v_ref[0, :, c0:c1]                        # (nk, hd) bf16
        s = lax.dot_general(q, k, (((1,), (1,)), ((), ())),
                            preferred_element_type=jnp.float32)       # (tq, nk)
        s = s - jnp.max(s, axis=-1, keepdims=True)
        p = jnp.exp(s)
        p = p * pl.reciprocal(jnp.sum(p, axis=-1, keepdims=True), approx=True)
        outs.append(jnp.dot(p.astype(_MXU_DTYPE), v,
                            preferred_element_type=jnp.float32))       # (tq, hd)
    # single lane-dense (tq, d_model) store (no per-head masked column writes)
    o_ref[0, :, :] = jnp.concatenate(outs, axis=-1).astype(o_ref.dtype)


def self_attention(q3, k3, v3, n_heads):
    """q3/k3/v3: (bs, nq, d) bf16 projections (query scale pre-folded).
    Grid (bs, nq/tq): K/V stay resident per batch, queries are tiled."""
    bs, nq, d = q3.shape
    hd = d // n_heads
    tq = _q_tile(nq)
    ab = jnp.dtype(_ACT_DTYPE).itemsize
    working = (4 * nq * d * ab               # resident K,V (double-buffered)
               + 4 * tq * d * ab             # q + out blocks (double-buffered)
               + 4 * tq * nq * 4)            # softmax temps
    return pl.pallas_call(
        functools.partial(_mha_kernel, n_heads=n_heads, head_dim=hd),
        out_shape=jax.ShapeDtypeStruct((bs, nq, d), _ACT_DTYPE),
        grid=(bs, pl.cdiv(nq, tq)),
        in_specs=[pl.BlockSpec((1, tq, d), lambda b, i: (b, i, 0)),
                  pl.BlockSpec((1, nq, d), lambda b, i: (b, 0, 0)),
                  pl.BlockSpec((1, nq, d), lambda b, i: (b, 0, 0))],
        out_specs=pl.BlockSpec((1, tq, d), lambda b, i: (b, i, 0)),
        compiler_params=_params(2, _vmem_limit(0, working)),
    )(q3, k3, v3)


# ----------------------- deformable attention kernel ------------------------

def _deform_core_kernel(v_ref, op_ref, ref_ref, o_ref, *,
                        n_heads, head_dim, n_levels, n_points,
                        spatial_shapes, level_start_index, ref_dim):
    """One (batch, query-tile) of MSDeformAttn: fused offset->pixel coordinate
    math, softmax(levels*points) weights, and bilinear sampling (grid_sample
    zeros padding, align_corners=False) expressed as a sparse interpolation
    matrix (2-D iota one-hot) x value slab on the MXU, weights folded in."""
    tq = op_ref.shape[1]
    lp = n_levels * n_points
    hlp = n_heads * lp
    outs = []
    for h in range(n_heads):
        lg = op_ref[0, :, 2 * hlp + h * lp:2 * hlp + (h + 1) * lp]    # (tq, L*P)
        lg = lg - jnp.max(lg, axis=-1, keepdims=True)
        e = jnp.exp(lg)
        aw = e * pl.reciprocal(jnp.sum(e, axis=-1, keepdims=True), approx=True)
        acc = jnp.zeros((tq, head_dim), jnp.float32)
        for lvl in range(n_levels):
            hl, wl = spatial_shapes[lvl]
            hw = hl * wl
            start = level_start_index[lvl]
            vlh = v_ref[0, start:start + hw,
                        h * head_dim:(h + 1) * head_dim]              # (hw, hd) bf16
            col = lax.broadcasted_iota(jnp.int32, (tq, hw), 1)
            m = jnp.zeros((tq, hw), jnp.float32)
            if ref_dim == 4:
                cx = ref_ref[0, :, lvl * 4 + 0:lvl * 4 + 1]
                cy = ref_ref[0, :, lvl * 4 + 1:lvl * 4 + 2]
                rw = ref_ref[0, :, lvl * 4 + 2:lvl * 4 + 3]
                rh = ref_ref[0, :, lvl * 4 + 3:lvl * 4 + 4]
            else:
                cx = ref_ref[0, :, lvl * 2 + 0:lvl * 2 + 1]
                cy = ref_ref[0, :, lvl * 2 + 1:lvl * 2 + 2]
            for p in range(n_points):
                c = (h * n_levels + lvl) * n_points + p
                ox = op_ref[0, :, c:c + 1]                 # x offset column
                oy = op_ref[0, :, hlp + c:hlp + c + 1]     # y offset column
                if ref_dim == 4:
                    lx = cx + ox * rw * (0.5 / n_points)
                    ly = cy + oy * rh * (0.5 / n_points)
                else:
                    lx = cx + ox * (1.0 / wl)
                    ly = cy + oy * (1.0 / hl)
                px = lx * wl - 0.5                 # grid_sample align_corners=False
                py = ly * hl - 0.5
                w_a = aw[:, lvl * n_points + p:lvl * n_points + p + 1]
                x0 = jnp.floor(px)
                y0 = jnp.floor(py)
                fx = px - x0
                fy = py - y0
                corners = ((x0, y0, (1.0 - fy) * (1.0 - fx)),
                           (x0 + 1.0, y0, (1.0 - fy) * fx),
                           (x0, y0 + 1.0, fy * (1.0 - fx)),
                           (x0 + 1.0, y0 + 1.0, fy * fx))
                # TODO(synk): derive the 3 neighbour corners from the base
                # one-hot with pltpu.roll (XLU) once edge cases (samples just
                # outside the map) are handled; 4 compare/select passes for now.
                for xi, yi, bw in corners:
                    valid = ((xi >= 0) & (xi <= wl - 1) &
                             (yi >= 0) & (yi <= hl - 1))
                    flat = jnp.where(valid, yi * wl + xi, -1.0).astype(jnp.int32)
                    m = m + jnp.where(col == flat, w_a * bw, 0.0)
            acc = acc + jnp.dot(m.astype(_MXU_DTYPE), vlh,
                                preferred_element_type=jnp.float32)
        outs.append(acc)
    # single lane-dense (tq, d_model) store (no per-head masked column writes)
    o_ref[0, :, :] = jnp.concatenate(outs, axis=-1).astype(o_ref.dtype)


def deform_attn_core(value, op, refpts, *, n_heads, n_levels, n_points,
                     spatial_shapes, level_start_index, ref_dim):
    """value: (bs, nv, d) projected (+masked) memory, bf16.
    op: (bs, nq, 3*H*L*P) fused sampling-offset/attention-logit projection,
        column layout [x-offsets | y-offsets | logits], each (head,level,point).
    refpts: (bs, nq, n_levels*ref_dim) reference points.  Returns (bs, nq, d)."""
    bs, nv, d = value.shape
    nq = op.shape[1]
    hlp = n_heads * n_levels * n_points
    hd = d // n_heads
    tq = _q_tile(nq)
    max_hw = max(h * w for h, w in spatial_shapes)
    working = (2 * nv * d * value.dtype.itemsize          # resident value (dbl-buf)
               + 4 * tq * 3 * hlp * 4                     # op blocks
               + 4 * tq * d * jnp.dtype(_ACT_DTYPE).itemsize
               + 6 * tq * max_hw * 4)                     # one-hot temps
    # TODO(synk): for very large levels (Hl*Wl >> 1024) switch value to
    # memory_space=pl.ANY with a manual double-buffered per-level DMA gather so
    # the one-hot / value residency fits v7x's 64 MiB VMEM at detection scales.
    kern = functools.partial(
        _deform_core_kernel, n_heads=n_heads, head_dim=hd, n_levels=n_levels,
        n_points=n_points, spatial_shapes=tuple(map(tuple, spatial_shapes)),
        level_start_index=tuple(int(s) for s in level_start_index),
        ref_dim=ref_dim)
    return pl.pallas_call(
        kern,
        out_shape=jax.ShapeDtypeStruct((bs, nq, d), _ACT_DTYPE),
        grid=(bs, pl.cdiv(nq, tq)),
        in_specs=[pl.BlockSpec((1, nv, d), lambda b, i: (b, 0, 0)),
                  pl.BlockSpec((1, tq, 3 * hlp), lambda b, i: (b, i, 0)),
                  pl.BlockSpec((1, tq, n_levels * ref_dim), lambda b, i: (b, i, 0))],
        out_specs=pl.BlockSpec((1, tq, d), lambda b, i: (b, i, 0)),
        compiler_params=_params(2, _vmem_limit(0, working)),
    )(value, op, refpts)


# ------------------------------- forward -----------------------------------

def decoder_layer_forward(params, tgt, tgt_query_pos, tgt_reference_points,
                          memory, spatial_shapes, level_start_index,
                          memory_key_padding_mask=None, self_attn_mask=None,
                          n_heads=8, n_levels=4, n_points=4):
    assert self_attn_mask is None   # TODO(synk): additive attention masks
    nq, bs, d = tgt.shape
    nv = memory.shape[0]
    hlp = n_heads * n_levels * n_points

    # canonical batch-major layout (one transpose in, one out)
    x = tgt.transpose(1, 0, 2).reshape(bs * nq, d)
    pos = tgt_query_pos.transpose(1, 0, 2).reshape(bs * nq, d)

    # ---- self attention (q = k = tgt + pos, v = tgt) + out-proj + norm2 ----
    sa = params["self_attn"]
    q, k, v = qkv_proj(x, pos, sa)                         # bf16, q pre-scaled
    attn = self_attention(q.reshape(bs, nq, d), k.reshape(bs, nq, d),
                          v.reshape(bs, nq, d), n_heads)
    x = linear_res_ln(attn.reshape(bs * nq, d), sa["w_o"], sa["b_o"], x,
                      params["norm2_g"], params["norm2_b"])

    # ---- multi-scale deformable cross attention + out-proj + norm1 ----
    ca = params["cross_attn"]
    mem = memory.transpose(1, 0, 2).reshape(bs * nv, d)
    val = linear(mem, ca["w_value"], ca["b_value"], out_dtype=_ACT_DTYPE)
    val = val.reshape(bs, nv, d)
    if memory_key_padding_mask is not None:
        val = jnp.where(memory_key_padding_mask[:, :, None], 0.0, val)

    # fused (x + pos) @ [sampling_offsets | attention_weights]
    op = posadd_linear(x, pos, ca["w_op"], ca["b_op"])     # (bs*nq, 3*hlp) f32
    ref_dim = tgt_reference_points.shape[-1]
    ref = tgt_reference_points.transpose(1, 0, 2, 3).reshape(bs, nq,
                                                             n_levels * ref_dim)
    dout = deform_attn_core(val, op.reshape(bs, nq, 3 * hlp), ref,
                            n_heads=n_heads, n_levels=n_levels,
                            n_points=n_points, spatial_shapes=spatial_shapes,
                            level_start_index=level_start_index,
                            ref_dim=ref_dim)
    x = linear_res_ln(dout.reshape(bs * nq, d), ca["w_out"], ca["b_out"], x,
                      params["norm1_g"], params["norm1_b"])

    # ---- FFN (linear1 -> relu -> linear2 -> +res -> norm3), fully fused ----
    x = ffn_ln(x, params["w1"], params["b1"], params["w2"], params["b2"],
               params["norm3_g"], params["norm3_b"])
    return x.reshape(bs, nq, d).transpose(1, 0, 2)


# ------------------------------- parameters --------------------------------

def init_params(key, d_model, d_ffn, n_heads, n_levels, n_points):
    keys = iter(jax.random.split(key, 32))

    def w(shape, scale=0.05):
        return jax.random.normal(next(keys), shape, jnp.float32) * scale

    hlp = n_heads * n_levels * n_points
    p = {}
    # nn.MultiheadAttention mapping: w_q/w_k/w_v = transposed thirds of
    # in_proj_weight; w_o = out_proj.weight.T.
    p["self_attn"] = dict(
        w_q=w((d_model, d_model)), b_q=w((d_model,)),
        w_k=w((d_model, d_model)), b_k=w((d_model,)),
        w_v=w((d_model, d_model)), b_v=w((d_model,)),
        w_o=w((d_model, d_model)), b_o=w((d_model,)),
    )
    # MSDeformAttn mapping: w_op columns = [sampling_offsets x | y | attention
    # weights], each ordered (head, level, point) — a one-time column
    # permutation of the PyTorch weights.
    p["cross_attn"] = dict(
        w_value=w((d_model, d_model)), b_value=w((d_model,)),
        w_op=w((d_model, 3 * hlp)), b_op=w((3 * hlp,), 0.2),
        w_out=w((d_model, d_model)), b_out=w((d_model,)),
    )
    for n in ("1", "2", "3"):
        p[f"norm{n}_g"] = jnp.ones((d_model,), jnp.float32)
        p[f"norm{n}_b"] = jnp.zeros((d_model,), jnp.float32)
    p["w1"] = w((d_model, d_ffn))
    p["b1"] = w((d_ffn,))
    p["w2"] = w((d_ffn, d_model))
    p["b2"] = w((d_model,))
    return p


def prepare_params(p, n_heads):
    """One-time wrapper-side prep: fold the 1/sqrt(head_dim) query scale into
    w_q/b_q and cast every matmul weight to bf16 (halves weight DMA bytes and
    removes the per-grid-step in-kernel casts)."""
    bf = lambda a: a.astype(_MXU_DTYPE)
    d = p["self_attn"]["w_q"].shape[0]
    scale = 1.0 / math.sqrt(d // n_heads)
    sa, ca = p["self_attn"], p["cross_attn"]
    q = dict(p)
    q["self_attn"] = dict(
        w_q=bf(sa["w_q"] * scale), b_q=sa["b_q"] * scale,
        w_k=bf(sa["w_k"]), b_k=sa["b_k"],
        w_v=bf(sa["w_v"]), b_v=sa["b_v"],
        w_o=bf(sa["w_o"]), b_o=sa["b_o"])
    q["cross_attn"] = dict(
        w_value=bf(ca["w_value"]), b_value=ca["b_value"],
        w_op=bf(ca["w_op"]), b_op=ca["b_op"],
        w_out=bf(ca["w_out"]), b_out=ca["b_out"])
    q["w1"] = bf(p["w1"])
    q["w2"] = bf(p["w2"])
    return q


if __name__ == "__main__":
    d_model, d_ffn = 64, 128
    n_heads, n_levels, n_points = 4, 2, 2
    nq, bs = 8, 2
    spatial_shapes = [(8, 8), (4, 4)]                    # (H, W) per level
    level_start_index = [0, 64]
    nv = sum(h * w for h, w in spatial_shapes)           # 80

    key = jax.random.PRNGKey(0)
    k_param, k1, k2, k3, k4 = jax.random.split(key, 5)
    params = prepare_params(
        init_params(k_param, d_model, d_ffn, n_heads, n_levels, n_points),
        n_heads)

    tgt = jax.random.normal(k1, (nq, bs, d_model), jnp.float32)
    tgt_query_pos = jax.random.normal(k2, (nq, bs, d_model), jnp.float32)
    memory = jax.random.normal(k3, (nv, bs, d_model), jnp.float32)
    centers = jax.random.uniform(k4, (nq, bs, n_levels, 2), minval=0.2, maxval=0.8)
    wh = jnp.full((nq, bs, n_levels, 2), 0.2, jnp.float32)
    tgt_reference_points = jnp.concatenate([centers, wh], axis=-1)   # (nq, bs, L, 4)

    out = decoder_layer_forward(params, tgt, tgt_query_pos, tgt_reference_points,
                                memory, spatial_shapes, level_start_index,
                                n_heads=n_heads, n_levels=n_levels,
                                n_points=n_points)
    out = jax.block_until_ready(out)
    assert out.shape == (nq, bs, d_model)
    assert bool(jnp.isfinite(out).all())
    print("KERNEL_OK")
</pallas_src>

<mosaic_0001>
module attributes {stable_mosaic.version = 11 : i64} {
  func.func @_qkv_kernel(%arg0: i32, %arg1: memref<16x64xf32, #tpu.memory_space<vmem>>, %arg2: memref<16x64xf32, #tpu.memory_space<vmem>>, %arg3: memref<64x64xbf16, #tpu.memory_space<vmem>>, %arg4: memref<64x64xbf16, #tpu.memory_space<vmem>>, %arg5: memref<64x64xbf16, #tpu.memory_space<vmem>>, %arg6: memref<1x64xf32, #tpu.memory_space<vmem>>, %arg7: memref<1x64xf32, #tpu.memory_space<vmem>>, %arg8: memref<1x64xf32, #tpu.memory_space<vmem>>, %arg9: memref<16x64xbf16, #tpu.memory_space<vmem>>, %arg10: memref<16x64xbf16, #tpu.memory_space<vmem>>, %arg11: memref<16x64xbf16, #tpu.memory_space<vmem>>) attributes {dimension_semantics = [#tpu.dimension_semantics<parallel>], iteration_bounds = array<i64: 1>, scalar_prefetch = 0 : i64, scratch_operands = 0 : i64, tpu.core_type = #tpu.core_type<tc>, window_params = [{transform_indices = @transform_0, window_bounds = array<i64: 16, 64>}, {transform_indices = @transform_1, window_bounds = array<i64: 16, 64>}, {pipeline_mode = #tpu.pipeline_mode<synchronous>, transform_indices = @transform_2, window_bounds = array<i64: 64, 64>}, {pipeline_mode = #tpu.pipeline_mode<synchronous>, transform_indices = @transform_3, window_bounds = array<i64: 64, 64>}, {pipeline_mode = #tpu.pipeline_mode<synchronous>, transform_indices = @transform_4, window_bounds = array<i64: 64, 64>}, {pipeline_mode = #tpu.pipeline_mode<synchronous>, transform_indices = @transform_5, window_bounds = array<i64: 1, 64>}, {pipeline_mode = #tpu.pipeline_mode<synchronous>, transform_indices = @transform_6, window_bounds = array<i64: 1, 64>}, {pipeline_mode = #tpu.pipeline_mode<synchronous>, transform_indices = @transform_7, window_bounds = array<i64: 1, 64>}, {transform_indices = @transform_8, window_bounds = array<i64: 16, 64>}, {transform_indices = @transform_9, window_bounds = array<i64: 16, 64>}, {transform_indices = @transform_10, window_bounds = array<i64: 16, 64>}]} {
    %c0 = arith.constant 0 : index
    %c0_0 = arith.constant 0 : index
    %0 = vector.load %arg1[%c0, %c0_0] : memref<16x64xf32, #tpu.memory_space<vmem>>, vector<16x64xf32>
    %c0_1 = arith.constant 0 : index
    %c0_2 = arith.constant 0 : index
    %1 = vector.load %arg2[%c0_1, %c0_2] : memref<16x64xf32, #tpu.memory_space<vmem>>, vector<16x64xf32>
    %2 = arith.addf %0, %1 : vector<16x64xf32>
    %3 = arith.truncf %2 : vector<16x64xf32> to vector<16x64xbf16>
    %4 = arith.truncf %0 : vector<16x64xf32> to vector<16x64xbf16>
    %c0_3 = arith.constant 0 : index
    %c0_4 = arith.constant 0 : index
    %5 = vector.load %arg3[%c0_3, %c0_4] : memref<64x64xbf16, #tpu.memory_space<vmem>>, vector<64x64xbf16>
    %cst = arith.constant dense<0.000000e+00> : vector<16x64xf32>
    %6 = tpu.matmul %3, %5, %cst {dimension_numbers = #tpu.dot_dimension_numbers<[1], [0], [0], [1], [0, 0, 1, 1], [], []>} : vector<16x64xbf16>, vector<64x64xbf16>, vector<16x64xf32> -> vector<16x64xf32>
    %c0_5 = arith.constant 0 : index
    %c0_6 = arith.constant 0 : index
    %7 = vector.load %arg6[%c0_5, %c0_6] : memref<1x64xf32, #tpu.memory_space<vmem>>, vector<1x64xf32>
    %8 = vector.broadcast %7 : vector<1x64xf32> to vector<16x64xf32>
    %9 = arith.addf %6, %8 : vector<16x64xf32>
    %10 = arith.truncf %9 : vector<16x64xf32> to vector<16x64xbf16>
    %c0_7 = arith.constant 0 : index
    %c0_8 = arith.constant 0 : index
    %11 = vector.load %arg9[%c0_7, %c0_8] : memref<16x64xbf16, #tpu.memory_space<vmem>>, vector<16x64xbf16>
    tpu.vector_store %arg9[%c0_7, %c0_8], %10 {strides = array<i32>} : memref<16x64xbf16, #tpu.memory_space<vmem>>, vector<16x64xbf16>,
    %c0_9 = arith.constant 0 : index
    %c0_10 = arith.constant 0 : index
    %12 = vector.load %arg4[%c0_9, %c0_10] : memref<64x64xbf16, #tpu.memory_space<vmem>>, vector<64x64xbf16>
    %cst_11 = arith.constant dense<0.000000e+00> : vector<16x64xf32>
    %13 = tpu.matmul %3, %12, %cst_11 {dimension_numbers = #tpu.dot_dimension_numbers<[1], [0], [0], [1], [0, 0, 1, 1], [], []>} : vector<16x64xbf16>, vector<64x64xbf16>, vector<16x64xf32> -> vector<16x64xf32>
    %c0_12 = arith.constant 0 : index
    %c0_13 = arith.constant 0 : index
    %14 = vector.load %arg7[%c0_12, %c0_13] : memref<1x64xf32, #tpu.memory_space<vmem>>, vector<1x64xf32>
    %15 = vector.broadcast %14 : vector<1x64xf32> to vector<16x64xf32>
    %16 = arith.addf %13, %15 : vector<16x64xf32>
    %17 = arith.truncf %16 : vector<16x64xf32> to vector<16x64xbf16>
    %c0_14 = arith.constant 0 : index
    %c0_15 = arith.constant 0 : index
    %18 = vector.load %arg10[%c0_14, %c0_15] : memref<16x64xbf16, #tpu.memory_space<vmem>>, vector<16x64xbf16>
    tpu.vector_store %arg10[%c0_14, %c0_15], %17 {strides = array<i32>} : memref<16x64xbf16, #tpu.memory_space<vmem>>, vector<16x64xbf16>,
    %c0_16 = arith.constant 0 : index
    %c0_17 = arith.constant 0 : index
    %19 = vector.load %arg5[%c0_16, %c0_17] : memref<64x64xbf16, #tpu.memory_space<vmem>>, vector<64x64xbf16>
    %cst_18 = arith.constant dense<0.000000e+00> : vector<16x64xf32>
    %20 = tpu.matmul %4, %19, %cst_18 {dimension_numbers = #tpu.dot_dimension_numbers<[1], [0], [0], [1], [0, 0, 1, 1], [], []>} : vector<16x64xbf16>, vector<64x64xbf16>, vector<16x64xf32> -> vector<16x64xf32>
    %c0_19 = arith.constant 0 : index
    %c0_20 = arith.constant 0 : index
    %21 = vector.load %arg8[%c0_19, %c0_20] : memref<1x64xf32, #tpu.memory_space<vmem>>, vector<1x64xf32>
    %22 = vector.broadcast %21 : vector<1x64xf32> to vector<16x64xf32>
    %23 = arith.addf %20, %22 : vector<16x64xf32>
    %24 = arith.truncf %23 : vector<16x64xf32> to vector<16x64xbf16>
    %c0_21 = arith.constant 0 : index
    %c0_22 = arith.constant 0 : index
    %25 = vector.load %arg11[%c0_21, %c0_22] : memref<16x64xbf16, #tpu.memory_space<vmem>>, vector<16x64xbf16>
    tpu.vector_store %arg11[%c0_21, %c0_22], %24 {strides = array<i32>} : memref<16x64xbf16, #tpu.memory_space<vmem>>, vector<16x64xbf16>,
    return
  }
  func.func @transform_0(%arg0: i32) -> (i32, i32) {
    %c0_i32 = arith.constant 0 : i32
    %c0_i32_0 = arith.constant 0 : i32
    return %arg0, %c0_i32 : i32, i32
  }
  func.func @transform_1(%arg0: i32) -> (i32, i32) {
    %c0_i32 = arith.constant 0 : i32
    %c0_i32_0 = arith.constant 0 : i32
    return %arg0, %c0_i32 : i32, i32
  }
  func.func @transform_2(%arg0: i32) -> (i32, i32) {
    %c0_i32 = arith.constant 0 : i32
    %c0_i32_0 = arith.constant 0 : i32
    %c0_i32_1 = arith.constant 0 : i32
    return %c0_i32, %c0_i32_0 : i32, i32
  }
  func.func @transform_3(%arg0: i32) -> (i32, i32) {
    %c0_i32 = arith.constant 0 : i32
    %c0_i32_0 = arith.constant 0 : i32
    %c0_i32_1 = arith.constant 0 : i32
    return %c0_i32, %c0_i32_0 : i32, i32
  }
  func.func @transform_4(%arg0: i32) -> (i32, i32) {
    %c0_i32 = arith.constant 0 : i32
    %c0_i32_0 = arith.constant 0 : i32
    %c0_i32_1 = arith.constant 0 : i32
    return %c0_i32, %c0_i32_0 : i32, i32
  }
  func.func @transform_5(%arg0: i32) -> (i32, i32) {
    %c0_i32 = arith.constant 0 : i32
    %c0_i32_0 = arith.constant 0 : i32
    %c0_i32_1 = arith.constant 0 : i32
    return %c0_i32, %c0_i32_0 : i32, i32
  }
  func.func @transform_6(%arg0: i32) -> (i32, i32) {
    %c0_i32 = arith.constant 0 : i32
    %c0_i32_0 = arith.constant 0 : i32
    %c0_i32_1 = arith.constant 0 : i32
    return %c0_i32, %c0_i32_0 : i32, i32
  }
  func.func @transform_7(%arg0: i32) -> (i32, i32) {
    %c0_i32 = arith.constant 0 : i32
    %c0_i32_0 = arith.constant 0 : i32
    %c0_i32_1 = arith.constant 0 : i32
    return %c0_i32, %c0_i32_0 : i32, i32
  }
  func.func @transform_8(%arg0: i32) -> (i32, i32) {
    %c0_i32 = arith.constant 0 : i32
    %c0_i32_0 = arith.constant 0 : i32
    return %arg0, %c0_i32 : i32, i32
  }
  func.func @transform_9(%arg0: i32) -> (i32, i32) {
    %c0_i32 = arith.constant 0 : i32
    %c0_i32_0 = arith.constant 0 : i32
    return %arg0, %c0_i32 : i32, i32
  }
  func.func @transform_10(%arg0: i32) -> (i32, i32) {
    %c0_i32 = arith.constant 0 : i32
    %c0_i32_0 = arith.constant 0 : i32
    return %arg0, %c0_i32 : i32, i32
  }
}

</mosaic_0001>

<bundles_post_ra>
// kernel: tpu_custom_call.1
= control target key start
LH: loop header
LB: loop body
LE: loop exit
PB: predicated region body
PF: predicated region fallthrough
CT: control target
= control target key end

     0   :  { %16 = vsyncpa [#allocation3], 0  ;;  %s942_s0 = inlined_call_operand.hbm [shape: f32[16,64], index: 0, kind: input, shape index: {}]   ;;  %s943_s1 = inlined_call_operand.hbm [shape: f32[16,64], index: 1, kind: input, shape index: {}]   ;;  %s944_s2 = inlined_call_operand.hbm [shape: bf16[64,64], index: 2, kind: input, shape index: {}]   ;;  %s945_s3 = inlined_call_operand.hbm [shape: bf16[64,64], index: 3, kind: input, shape index: {}]   ;;  %s946_s4 = inlined_call_operand.hbm [shape: bf16[64,64], index: 4, kind: input, shape index: {}]   ;;  %s947_s5 = inlined_call_operand.vmem [shape: f32[1,64], index: 5, kind: input, shape index: {}]   ;;  %s948_s6 = inlined_call_operand.vmem [shape: f32[1,64], index: 6, kind: input, shape index: {}]   ;;  %s949_s7 = inlined_call_operand.vmem [shape: f32[1,64], index: 7, kind: input, shape index: {}]   ;;  %s950_s8 = inlined_call_operand.hbm [shape: bf16[16,64], index: 8, kind: output, shape index: {0}]   ;;  %s951_s9 = inlined_call_operand.hbm [shape: bf16[16,64], index: 9, kind: output, shape index: {1}]   ;;  %s952_s10 = inlined_call_operand.hbm [shape: bf16[16,64], index: 10, kind: output, shape index: {2}]  }
   0x1   :  { %17 = vsyncpa [#allocation6], 0 }
   0x2   :  { %18 = vsyncpa [#allocation9], 0 }
   0x3   :  { %19 = vsyncpa [#allocation4], 0 }
   0x4   :  { %20 = vsyncpa [#allocation13], 0  ;;  %s732_s13 = smov [#allocation5]   ;;  %s546_s17 = scalar_lea.hbm %s943_s1, 256 }
   0x5   :  { %s38_s14 = sshll.u32 %s732_s13, 4  ;;  %p547_p0 = scmp.ne.s32.totalorder %s943_s1, %s546_s17  ;;  %s39_s14 = int_to_ptr.vmem [resolvable:$true] %s38_s14 }
   0x6   :  { %p550_p1 = scmp.lt.u32.totalorder %s546_s17, %s943_s1 }
   0x8   :  { %p552_p2 = pnand %p550_p1, %p547_p0 }
   0xa   :  { %555 = shalt.err (!%p552_p2)
}
   0xb   :  { %s556_s22 = scalar_lea.vmem %s39_s14, 256  ;;  %p561_p4 = scmp.lt.s32.totalorder %s39_s14, %s39_s14 }
   0xc   :  { %p557_p3 = scmp.ne.s32.totalorder %s39_s14, %s556_s22  ;;  %p562_p5 = scmp.lt.s32.totalorder %s556_s22, %s556_s22 }
   0xe   :  { %p563_p6 = por %p562_p5, %p561_p4 }
  0x10   :  { %p564_p7 = pnand %p563_p6, %p557_p3 }
  0x12   :  { %567 = shalt.err (!%p564_p7)
}
  0x13   :  { %s733_s23 = smov 128   ;;  %s734_s24 = smov 8  }
  0x14   :  { %44 = dma.hbm_to_vmem [thread:$0]  %s943_s1, 256, %s39_s14, [#allocation6], %s733_s23, %s733_s23, %s734_s24  }
  0x15   :  { %s735_s27 = smov [#allocation8]   ;;  %s736_s29 = smov [#allocation2]  }
  0x16   :  { %s62_s28 = sshll.u32 %s735_s27, 4  ;;  %s26_s30 = sshll.u32 %s736_s29, 4  ;;  %s63_s28 = int_to_ptr.vmem [resolvable:$true] %s62_s28  ;;  %s27_s30 = int_to_ptr.vmem [resolvable:$true] %s26_s30 }
  0x17   :  { %s568_s13 = scalar_lea.hbm %s945_s3, 512 }
  0x18   :  { %p569_p8 = scmp.ne.s32.totalorder %s945_s3, %s568_s13  ;;  %p572_p9 = scmp.lt.u32.totalorder %s568_s13, %s945_s3 }
  0x1a   :  { %p574_p10 = pnand %p572_p9, %p569_p8 }
  0x1c   :  { %577 = shalt.err (!%p574_p10)
}
  0x1d   :  { %s578_s1 = scalar_lea.vmem %s63_s28, 512  ;;  %p583_p12 = scmp.lt.s32.totalorder %s63_s28, %s63_s28 }
  0x1e   :  { %p579_p11 = scmp.ne.s32.totalorder %s63_s28, %s578_s1  ;;  %p584_p13 = scmp.lt.s32.totalorder %s578_s1, %s578_s1 }
  0x20   :  { %p585_p0 = por %p584_p13, %p583_p12 }
  0x22   :  { %p586_p1 = pnand %p585_p0, %p579_p11 }
  0x24   :  { %589 = shalt.err (!%p586_p1)
}
  0x25   :  { %s737_s14 = smov 64   ;;  %s738_s19 = smov 4  }
  0x26   :  { %68 = dma.hbm_to_vmem [thread:$0]  %s945_s3, 512, %s63_s28, [#allocation9], %s737_s14, %s737_s14, %s738_s19  }
  0x27   :  { %s590_s26 = scalar_lea.hbm %s942_s0, 256 }
  0x28   :  { %p591_p2 = scmp.ne.s32.totalorder %s942_s0, %s590_s26  ;;  %p594_p3 = scmp.lt.u32.totalorder %s590_s26, %s942_s0 }
  0x2a   :  { %p596_p4 = pnand %p594_p3, %p591_p2 }
  0x2c   :  { %599 = shalt.err (!%p596_p4)
}
  0x2d   :  { %s600_s13 = scalar_lea.vmem %s27_s30, 256  ;;  %p605_p6 = scmp.lt.s32.totalorder %s27_s30, %s27_s30 }
  0x2e   :  { %p601_p5 = scmp.ne.s32.totalorder %s27_s30, %s600_s13  ;;  %p606_p7 = scmp.lt.s32.totalorder %s600_s13, %s600_s13 }
  0x30   :  { %p607_p8 = por %p606_p7, %p605_p6 }
  0x32   :  { %p608_p9 = pnand %p607_p8, %p601_p5 }
  0x34   :  { %611 = shalt.err (!%p608_p9)
}
  0x35   :  { %32 = dma.hbm_to_vmem [thread:$0]  %s942_s0, 256, %s27_s30, [#allocation3], %s733_s23, %s733_s23, %s734_s24  }
  0x36   :  { %s739_s15 = smov [#allocation7]   ;;  %s740_s17 = smov [#allocation10]  }
  0x37   :  { %s50_s16 = sshll.u32 %s739_s15, 4  ;;  %s74_s18 = sshll.u32 %s740_s17, 4  ;;  %s51_s16 = int_to_ptr.vmem [resolvable:$true] %s50_s16  ;;  %s75_s18 = int_to_ptr.vmem [resolvable:$true] %s74_s18 }
  0x38   :  { %s612_s21 = scalar_lea.hbm %s944_s2, 512 }
  0x39   :  { %p613_p10 = scmp.ne.s32.totalorder %s944_s2, %s612_s21  ;;  %p616_p11 = scmp.lt.u32.totalorder %s612_s21, %s944_s2 }
  0x3b   :  { %p618_p12 = pnand %p616_p11, %p613_p10 }
  0x3d   :  { %621 = shalt.err (!%p618_p12)
}
  0x3e   :  { %s622_s0 = scalar_lea.vmem %s51_s16, 512  ;;  %p627_p0 = scmp.lt.s32.totalorder %s51_s16, %s51_s16 }
  0x3f   :  { %p623_p13 = scmp.ne.s32.totalorder %s51_s16, %s622_s0  ;;  %p628_p1 = scmp.lt.s32.totalorder %s622_s0, %s622_s0 }
  0x41   :  { %p629_p2 = por %p628_p1, %p627_p0 }
  0x43   :  { %p630_p3 = pnand %p629_p2, %p623_p13 }
  0x45   :  { %633 = shalt.err (!%p630_p3)
}
  0x46   :  { %56 = dma.hbm_to_vmem [thread:$0]  %s944_s2, 512, %s51_s16, [#allocation6], %s737_s14, %s737_s14, %s738_s19  }
  0x47   :  { %s634_s11 = scalar_lea.hbm %s946_s4, 512 }
  0x48   :  { %p635_p4 = scmp.ne.s32.totalorder %s946_s4, %s634_s11  ;;  %p638_p5 = scmp.lt.u32.totalorder %s634_s11, %s946_s4 }
  0x4a   :  { %p640_p6 = pnand %p638_p5, %p635_p4 }
  0x4c   :  { %643 = shalt.err (!%p640_p6)
}
  0x4d   :  { %s644_s15 = scalar_lea.vmem %s75_s18, 512  ;;  %p649_p8 = scmp.lt.s32.totalorder %s75_s18, %s75_s18 }
  0x4e   :  { %p645_p7 = scmp.ne.s32.totalorder %s75_s18, %s644_s15  ;;  %p650_p9 = scmp.lt.s32.totalorder %s644_s15, %s644_s15 }
  0x50   :  { %p651_p10 = por %p650_p9, %p649_p8 }
  0x52   :  { %p652_p11 = pnand %p651_p10, %p645_p7 }
  0x54   :  { %655 = shalt.err (!%p652_p11)
}
  0x55   :  { %80 = dma.hbm_to_vmem [thread:$0]  %s946_s4, 512, %s75_s18, [#allocation9], %s737_s14, %s737_s14, %s738_s19  }
  0x56   :  { %722 = dma.done.wait [#allocation3], 256  }
  0x57   :  { %723 = vsyncadd [#allocation3], 4294967040 }
  0x58   :  { %724 = dma.done.wait [#allocation6], 768  }
  0x59   :  { %725 = vsyncadd [#allocation6], 4294966528 }
  0x5a   :  { %726 = dma.done.wait [#allocation9], 1024  }
  0x5b   :  { %727 = vsyncadd [#allocation9], 4294966272  ;;  %v741_v0 = vmov 0.0   ;;  %vm742_vm0 = vmmov 0   ;;  %v534_v1 = vld [vmem:[#allocation7] sm:$0xff]   ;;  %v535_v2 = vld [vmem:[#allocation7 + $0x8] sm:$0xff]  }
  0x5c   :  { %484 = vmatprep.subr.bf16.mxu0 %v741_v0  ;;  %496 = vmatprep.subr.bf16.mxu1 %v741_v0  ;;  %v536_v3 = vld [vmem:[#allocation7 + $0x10] sm:$0xff]   ;;  %v538_v4 = vld [vmem:[#allocation8] sm:$0xff]   ;;  %v104_v6 = vld [vmem:[#allocation2 + $0x8] sm:$0xff]  ;;  %vm150_vm1 = vcmask 523264   ;;  %vm203_vm2 = vcmask 519168   ;;  %s743_s20 = smov [#allocation11]  }
  0x5d   :  { %492 = vmatprep.mubr.msk.bf16.mxu0 %vm742_vm0, %v741_v0  ;;  %504 = vmatprep.mubr.msk.bf16.mxu1 %vm742_vm0, %v741_v0  ;;  %v103_v5 = vld [vmem:[#allocation2] sm:$0xff]  ;;  %v105_v7 = vld [vmem:[#allocation5] sm:$0xff]  ;;  %v106_v8 = vld [vmem:[#allocation5 + $0x8] sm:$0xff]  ;;  %s394_s21 = sshll.u32 %s743_s20, 4  ;;  %s395_s21 = int_to_ptr.vmem [resolvable:$true] %s394_s21 }
  0x5e   :  { %485 = vmatpush3.bf16.msra.mxu0 %v534_v1  ;;  %497 = vmatpush3.bf16.msra.mxu1 %v538_v4  ;;  %v539_v9 = vld [vmem:[#allocation8 + $0x8] sm:$0xff]   ;;  %v537_v10 = vld [vmem:[#allocation7 + $0x18] sm:$0xff]   ;;  %v107_v11 = vadd.f32 %v105_v7, %v103_v5  ;;  %v108_v12 = vadd.f32 %v106_v8, %v104_v6  ;;  %v541_v13 = vld [vmem:[#allocation8 + $0x10] sm:$0xff]   ;;  %v110_v20 = vpack.c.bf16 %v104_v6, %v103_v5  ;;  %p661_p13 = scmp.lt.s32.totalorder %s395_s21, %s395_s21 }
  0x5f   :  { %486 = vmatprep.subr.bf16.mxu0 %v741_v0  ;;  %498 = vmatprep.subr.bf16.mxu1 %v741_v0  ;;  %v540_v15 = vld [vmem:[#allocation10] sm:$0xff]   ;;  %v543_v16 = vld [vmem:[#allocation8 + $0x18] sm:$0xff]   ;;  %v542_v17 = vld [vmem:[#allocation10 + $0x8] sm:$0xff]  }
  0x60   :  { %v109_v14 = vpack.c.bf16 %v108_v12, %v107_v11  ;;  %v544_v18 = vld [vmem:[#allocation10 + $0x10] sm:$0xff]   ;;  %v545_v19 = vld [vmem:[#allocation10 + $0x18] sm:$0xff]   ;;  %v439_v21 = vld [vmem:[%s947_s5] ss:$0 sm:$0xff]  ;;  %s744_s5 = smov [#allocation12]  }
  0x61   :  { %v447_v26 = vld [vmem:[%s948_s6] ss:$0 sm:$0xff]  ;;  %s406_s22 = sshll.u32 %s744_s5, 4  ;;  %s656_s6 = scalar_lea.vmem %s395_s21, 128  ;;  %s407_s22 = int_to_ptr.vmem [resolvable:$true] %s406_s22 }
  0x62   :  { %487 = vmatpush3.bf16.msra.mxu0 %v535_v2  ;;  %499 = vmatpush3.bf16.msra.mxu1 %v539_v9  ;;  %p657_p12 = scmp.ne.s32.totalorder %s395_s21, %s656_s6  ;;  %p662_p0 = scmp.lt.s32.totalorder %s656_s6, %s656_s6 }
  0x63   :  { %488 = vmatprep.subr.bf16.mxu0 %v741_v0  ;;  %500 = vmatprep.subr.bf16.mxu1 %v741_v0 }
  0x64   :  { %p663_p1 = por %p662_p0, %p661_p13 }
  0x66   :  { %489 = vmatpush3.bf16.msra.mxu0 %v536_v3  ;;  %501 = vmatpush3.bf16.msra.mxu1 %v541_v13  ;;  %p664_p2 = pnand %p663_p1, %p657_p12 }
  0x67   :  { %490 = vmatprep.subr.bf16.mxu0 %v741_v0  ;;  %502 = vmatprep.subr.bf16.mxu1 %v741_v0 }
  0x6a   :  { %491 = vmatpush3.bf16.msra.mxu0 %v537_v10  ;;  %503 = vmatpush3.bf16.msra.mxu1 %v543_v16 }
  0x6b   :  { %508 = vmatprep.subr.bf16.mxu0 %v741_v0 }
  0x6d   :  { %493 = vmatmul.mubr.msk.bf16.vlgmr.msra.gmra.mrb[0].mxu0 %vm150_vm1, %v109_v14  ;;  %505 = vmatmul.mubr.msk.bf16.vlgmr.msra.gmra.mrb[0].mxu1 %vm150_vm1, %v109_v14 }
  0x6e   :  { %509 = vmatpush3.bf16.msra.mxu0 %v540_v15  ;;  %516 = vmatprep.mubr.msk.bf16.mxu0 %vm742_vm0, %v741_v0 }
  0x6f   :  { %510 = vmatprep.subr.bf16.mxu0 %v741_v0 }
  0x72   :  { %511 = vmatpush3.bf16.msra.mxu0 %v542_v17 }
  0x73   :  { %512 = vmatprep.subr.bf16.mxu0 %v741_v0 }
  0x76   :  { %513 = vmatpush3.bf16.msra.mxu0 %v544_v18 }
  0x77   :  { %514 = vmatprep.subr.bf16.mxu0 %v741_v0 }
  0x7a   :  { %515 = vmatpush3.bf16.msra.mxu0 %v545_v19 }
  0x7d   :  { %517 = vmatmul.mubr.msk.bf16.vlgmr.msra.gmra.mrb[4].mxu0 %vm150_vm1, %v110_v20 }
 0x140   :  { %v188_v22 = vpop.f32.mrb[0].mxu0  ;;  %v279_v30 = vpop.f32.mrb[0].mxu1 }
 0x141   :  { %v189_v23 = vadd.f32 %v439_v21, %v188_v22  ;;  %v494_v24 = vpop.f32.mrb[1].mxu0  ;;  %v280_v32 = vadd.f32 %v447_v26, %v279_v30  ;;  %v506_v33 = vpop.f32.mrb[1].mxu1 }
 0x142   :  { %v191_v25 = vpop.f32.mrb[2].mxu0  ;;  %v282_v34 = vpop.f32.mrb[2].mxu1 }
 0x143   :  { %v463_v27 = vpack.c.bf16 %v189_v23, %v189_v23  ;;  %v192_v28 = vadd.f32 %v439_v21, %v191_v25  ;;  %v495_v29 = vpop.f32.mrb[3].mxu0  ;;  %v465_v35 = vpack.c.bf16 %v280_v32, %v280_v32  ;;  %v283_v36 = vadd.f32 %v447_v26, %v282_v34  ;;  %v507_v37 = vpop.f32.mrb[3].mxu1 }
 0x145   :  { %v464_v31 = vpack.c.bf16 %v192_v28, %v192_v28  ;;  %204 = vst.msk [vmem:[#allocation11] sm:$0xf] %vm203_vm2, %v463_v27 }
 0x147   :  { %205 = vst.msk [vmem:[#allocation11 + $0x4] sm:$0xf] %vm203_vm2, %v464_v31 }
 0x148   :  { %667 = shalt.err (!%p664_p2)
}
 0x149   :  { %s668_s27 = scalar_lea.hbm %s950_s8, 128 }
 0x14a   :  { %p669_p3 = scmp.ne.s32.totalorder %s950_s8, %s668_s27  ;;  %p672_p4 = scmp.lt.u32.totalorder %s668_s27, %s950_s8 }
 0x14c   :  { %p674_p5 = pnand %p672_p4, %p669_p3 }
 0x14e   :  { %677 = shalt.err (!%p674_p5)
}
 0x14f   :  { %400 = dma.vmem_to_hbm [thread:$0]  %s395_s21, 128, %s950_s8, [#allocation4], %s737_s14, %s737_s14, %s738_s19   ;;  %v466_v38 = vpack.c.bf16 %v283_v36, %v283_v36  ;;  %294 = vst.msk [vmem:[#allocation12] sm:$0xf] %vm203_vm2, %v465_v35 }
 0x150   :  { %s678_s12 = scalar_lea.vmem %s407_s22, 128  ;;  %p683_p7 = scmp.lt.s32.totalorder %s407_s22, %s407_s22 }
 0x151   :  { %295 = vst.msk [vmem:[#allocation12 + $0x4] sm:$0xf] %vm203_vm2, %v466_v38  ;;  %p679_p6 = scmp.ne.s32.totalorder %s407_s22, %s678_s12  ;;  %p684_p8 = scmp.lt.s32.totalorder %s678_s12, %s678_s12 }
 0x153   :  { %p685_p9 = por %p684_p8, %p683_p7 }
 0x155   :  { %p686_p10 = pnand %p685_p9, %p679_p6 }
 0x157   :  { %689 = shalt.err (!%p686_p10)
}
 0x158   :  { %s690_s28 = scalar_lea.hbm %s951_s9, 128 }
 0x159   :  { %p691_p11 = scmp.ne.s32.totalorder %s951_s9, %s690_s28  ;;  %p694_p12 = scmp.lt.u32.totalorder %s690_s28, %s951_s9 }
 0x15b   :  { %p696_p13 = pnand %p694_p12, %p691_p11 }
 0x15d   :  { %699 = shalt.err (!%p696_p13)
}
 0x15e   :  { %412 = dma.vmem_to_hbm [thread:$0]  %s407_s22, 128, %s951_s9, [#allocation13], %s737_s14, %s737_s14, %s738_s19   ;;  %v372_v40 = vpop.f32.mrb[4].mxu0 }
 0x15f   :  { %v455_v39 = vld [vmem:[%s949_s7] ss:$0 sm:$0xff]  ;;  %v518_v42 = vpop.f32.mrb[5].mxu0  ;;  %s745_s20 = smov [#allocation14]  }
 0x160   :  { %v373_v41 = vadd.f32 %v455_v39, %v372_v40  ;;  %v375_v43 = vpop.f32.mrb[6].mxu0  ;;  %s418_s21 = sshll.u32 %s745_s20, 4  ;;  %s419_s21 = int_to_ptr.vmem [resolvable:$true] %s418_s21 }
 0x161   :  { %v376_v45 = vadd.f32 %v455_v39, %v375_v43  ;;  %v519_v46 = vpop.f32.mrb[7].mxu0  ;;  %s700_s9 = scalar_lea.vmem %s419_s21, 128  ;;  %p705_p1 = scmp.lt.s32.totalorder %s419_s21, %s419_s21 }
 0x162   :  { %v467_v44 = vpack.c.bf16 %v373_v41, %v373_v41  ;;  %p701_p0 = scmp.ne.s32.totalorder %s419_s21, %s700_s9  ;;  %p706_p2 = scmp.lt.s32.totalorder %s700_s9, %s700_s9 }
 0x163   :  { %v468_v47 = vpack.c.bf16 %v376_v45, %v376_v45 }
 0x164   :  { %387 = vst.msk [vmem:[#allocation14] sm:$0xf] %vm203_vm2, %v467_v44  ;;  %p707_p3 = por %p706_p2, %p705_p1 }
 0x165   :  { %388 = vst.msk [vmem:[#allocation14 + $0x4] sm:$0xf] %vm203_vm2, %v468_v47 }
 0x166   :  { %p708_p4 = pnand %p707_p3, %p701_p0 }
 0x168   :  { %711 = shalt.err (!%p708_p4)
}
 0x169   :  { %s712_s22 = scalar_lea.hbm %s952_s10, 128 }
 0x16a   :  { %p713_p5 = scmp.ne.s32.totalorder %s952_s10, %s712_s22  ;;  %p716_p6 = scmp.lt.u32.totalorder %s712_s22, %s952_s10 }
 0x16c   :  { %p718_p7 = pnand %p716_p6, %p713_p5 }
 0x16e   :  { %721 = shalt.err (!%p718_p7)
}
 0x16f   :  { %424 = dma.vmem_to_hbm [thread:$0]  %s419_s21, 128, %s952_s10, [#allocation13], %s737_s14, %s737_s14, %s738_s19  }
 0x170   :  { %728 = dma.done.wait [#allocation4], 128  }
 0x171   :  { %729 = vsyncadd [#allocation4], 4294967168 }
 0x172   :  { %730 = dma.done.wait [#allocation13], 256  }
 0x173   :  { %731 = vsyncadd [#allocation13], 4294967040 }
 0x174   :  { %434 = vsyncpa [#allocation3], 1 }
 0x175   :  { %435 = vsyncpa [#allocation6], 1 }
 0x176   :  { %436 = vsyncpa [#allocation9], 1 }
 0x177   :  { %437 = vsyncpa [#allocation4], 1 }
 0x178   :  { %438 = vsyncpa [#allocation13], 1 }

</bundles_post_ra>
